<compile_context>
chip_gen: v6e
topology: v6e:2x2x1
jax: 0.10.0
libtpu: 0.0.40
codegen_flags: <defaults>
</compile_context>

<pallas_src>
import functools

import jax
import jax.numpy as jnp
from jax import lax
from jax.experimental import pallas as pl
from jax.experimental.pallas import tpu as pltpu


def _round_up(a: int, b: int) -> int:
    return (a + b - 1) // b * b


def _gap_kernel(x_ref, o_ref, acc_ref, *, inv_hw, hw, tile_hw, hw_ragged,
                lane_group):
    """One (tile_nc, tile_hw) block; finalize on the last HW (reduction) step."""
    k = pl.program_id(1)

    if lane_group:
        # tile_hw is a multiple of 128: accumulate lane-group partial sums
        # into a small (tile_nc, 128) f32 scratch (pure VPU adds per step).
        @pl.when(k == 0)
        def _init():
            acc_ref[...] = jnp.zeros_like(acc_ref)

        tile_nc = x_ref.shape[0]
        groups = tile_hw // 128
        if hw_ragged:
            # Global column index of each lane of the current tile; lanes past
            # the true HW extent (only possible in the last HW tile) are zeroed
            # before they can corrupt the row sums.
            base_col = (lax.broadcasted_iota(jnp.int32, (tile_nc, 128), 1)
                        + k * tile_hw)

        def group_slice(g):
            # Static, 128-lane-aligned slice of the VMEM block; per-slice f32
            # upcast avoids materializing a full-tile f32 copy.
            v = x_ref[:, g * 128:(g + 1) * 128].astype(jnp.float32)
            if hw_ragged:
                v = jnp.where(base_col + g * 128 < hw, v, 0.0)
            return v

        part = group_slice(0)
        for g in range(1, groups):
            part = part + group_slice(g)
        acc_ref[...] += part

        @pl.when(k == pl.num_programs(1) - 1)
        def _finalize():
            # Single cross-lane (XLU) reduce per NC tile, scaled once by 1/HW.
            row_sum = jnp.sum(acc_ref[...], axis=-1, keepdims=True)
            o_ref[...] = (row_sum * inv_hw).astype(o_ref.dtype)
    else:
        # tile_hw == HW and HW is not a multiple of 128 => single reduction
        # step: reduce the full-extent tile directly (no accumulator needed).
        x = x_ref[...].astype(jnp.float32)
        o_ref[...] = (jnp.sum(x, axis=-1, keepdims=True) * inv_hw
                      ).astype(o_ref.dtype)


def global_avg_pool_2d(x, *, tile_nc: int = 512, tile_hw: int | None = None):
    """x: (N, C, H, W) -> (N, C), mean over spatial dims (GlobalAvgPool2d)."""
    N, C, H, W = x.shape
    NC, HW = N * C, H * W
    itemsize = x.dtype.itemsize

    # With HW on the lane axis, HW < 128 wastes most of every DMA'd vreg row
    # on a 100%-DMA-bound kernel; let XLA handle the tiny-spatial case.
    # TODO(synk): lane-pack several (n, c) rows per vreg row instead of
    # falling back for HW < 128.
    if HW < 128:
        return jnp.mean(x.astype(jnp.float32), axis=(2, 3)).astype(x.dtype)

    x2 = x.reshape(NC, HW)  # glue reshape in plain JAX (reduction axis -> lanes)

    # ~8 MiB input blocks (double-buffered) sit near the HBM roofline on
    # v6e/v7x and fit comfortably in v7x's 64 MiB VMEM; also fine on v5e.
    if tile_hw is None:
        tile_hw = 4096 if itemsize >= 4 else 8192
    if HW <= tile_hw:
        tile_hw = HW                 # single full-extent HW tile
    if NC <= tile_nc:
        tile_nc = NC                 # single full-extent NC tile ...
        # ... unless the problem is big enough that splitting the parallel NC
        # axis in two lets both v7x TensorCores work.
        if NC >= 16 and NC * tile_hw * itemsize >= (4 << 20):
            tile_nc = _round_up(pl.cdiv(NC, 2), 8)

    grid = (pl.cdiv(NC, tile_nc), pl.cdiv(HW, tile_hw))
    hw_ragged = (HW % tile_hw) != 0          # ragged last HW tile -> mask in-kernel
    lane_group = (tile_hw % 128) == 0        # lane-group accumulator path

    # VMEM budget: double-buffered input blocks + small (tile_nc, 128) f32
    # accumulator + slack, clamped to the device's physical VMEM - headroom.
    in_block_bytes = tile_nc * tile_hw * itemsize
    acc_bytes = tile_nc * 128 * 4
    try:
        vmem_cap = pltpu.get_tpu_info().vmem_capacity_bytes
    except Exception:
        vmem_cap = 64 * 1024 * 1024          # conservative (v7x per-TC VMEM)
    vmem_limit = min(vmem_cap - (8 << 20),
                     max(32 << 20, 4 * in_block_bytes + acc_bytes + (8 << 20)))

    kernel = functools.partial(
        _gap_kernel, inv_hw=1.0 / HW, hw=HW, tile_hw=tile_hw,
        hw_ragged=hw_ragged, lane_group=lane_group)

    out2 = pl.pallas_call(
        kernel,
        out_shape=jax.ShapeDtypeStruct((NC, 1), x.dtype),
        grid_spec=pltpu.PrefetchScalarGridSpec(
            num_scalar_prefetch=0,
            grid=grid,
            in_specs=[pl.BlockSpec((tile_nc, tile_hw), lambda i, k: (i, k))],
            out_specs=pl.BlockSpec((tile_nc, 1), lambda i, k: (i, 0)),
            scratch_shapes=[pltpu.VMEM((tile_nc, 128), jnp.float32)],
        ),
        compiler_params=pltpu.CompilerParams(
            dimension_semantics=("parallel", "arbitrary"),
            vmem_limit_bytes=int(vmem_limit),
        ),
    )(x2)

    return out2.reshape(N, C)


if __name__ == "__main__":
    key = jax.random.PRNGKey(0)
    N, C, H, W = 2, 4, 16, 16
    x = jax.random.normal(key, (N, C, H, W), dtype=jnp.float32)

    y = jax.block_until_ready(global_avg_pool_2d(x))

    # sanity check against plain-JAX reference
    ref = jnp.mean(x, axis=(2, 3))
    assert y.shape == (N, C), y.shape
    assert jnp.allclose(y, ref, atol=1e-5, rtol=1e-5), (y, ref)

    print("KERNEL_OK")
</pallas_src>

<mosaic_0001>
module attributes {stable_mosaic.version = 11 : i64} {
  func.func @_gap_kernel(%arg0: i32, %arg1: i32, %arg2: memref<8x256xf32, #tpu.memory_space<vmem>>, %arg3: memref<8x1xf32, #tpu.memory_space<vmem>>, %arg4: memref<8x128xf32, #tpu.memory_space<vmem>>) attributes {dimension_semantics = [#tpu.dimension_semantics<parallel>, #tpu.dimension_semantics<arbitrary>], iteration_bounds = array<i64: 1, 1>, scalar_prefetch = 0 : i64, scratch_operands = 1 : i64, tpu.core_type = #tpu.core_type<tc>, window_params = [{transform_indices = @transform_0, window_bounds = array<i64: 8, 256>}, {transform_indices = @transform_1, window_bounds = array<i64: 8, 1>}]} {
    %c0_i32 = arith.constant 0 : i32
    %0 = arith.cmpi eq, %arg1, %c0_i32 : i32
    %1 = arith.extui %0 : i1 to i32
    %c0_i32_0 = arith.constant 0 : i32
    %2 = arith.cmpi ne, %1, %c0_i32_0 : i32
    scf.if %2 {
      %cst = arith.constant 0.000000e+00 : f32
      %12 = vector.broadcast %cst : f32 to vector<8x128xf32>
      %c0_9 = arith.constant 0 : index
      %c0_10 = arith.constant 0 : index
      %13 = vector.load %arg4[%c0_9, %c0_10] : memref<8x128xf32, #tpu.memory_space<vmem>>, vector<8x128xf32>
      tpu.vector_store %arg4[%c0_9, %c0_10], %12 {strides = array<i32>} : memref<8x128xf32, #tpu.memory_space<vmem>>, vector<8x128xf32>,
    } else {
    }
    %c0 = arith.constant 0 : index
    %c0_1 = arith.constant 0 : index
    %3 = vector.load %arg2[%c0, %c0_1] : memref<8x256xf32, #tpu.memory_space<vmem>>, vector<8x128xf32>
    %c0_2 = arith.constant 0 : index
    %c128 = arith.constant 128 : index
    %4 = vector.load %arg2[%c0_2, %c128] : memref<8x256xf32, #tpu.memory_space<vmem>>, vector<8x128xf32>
    %5 = arith.addf %3, %4 : vector<8x128xf32>
    %c0_3 = arith.constant 0 : index
    %c0_4 = arith.constant 0 : index
    %6 = vector.load %arg4[%c0_3, %c0_4] : memref<8x128xf32, #tpu.memory_space<vmem>>, vector<8x128xf32>
    %7 = arith.addf %6, %5 : vector<8x128xf32>
    %c0_5 = arith.constant 0 : index
    %c0_6 = arith.constant 0 : index
    %8 = vector.load %arg4[%c0_5, %c0_6] : memref<8x128xf32, #tpu.memory_space<vmem>>, vector<8x128xf32>
    tpu.vector_store %arg4[%c0_5, %c0_6], %7 {strides = array<i32>} : memref<8x128xf32, #tpu.memory_space<vmem>>, vector<8x128xf32>,
    %c0_i32_7 = arith.constant 0 : i32
    %9 = arith.cmpi eq, %arg1, %c0_i32_7 : i32
    %10 = arith.extui %9 : i1 to i32
    %c0_i32_8 = arith.constant 0 : i32
    %11 = arith.cmpi ne, %10, %c0_i32_8 : i32
    scf.if %11 {
      %c0_9 = arith.constant 0 : index
      %c0_10 = arith.constant 0 : index
      %12 = vector.load %arg4[%c0_9, %c0_10] : memref<8x128xf32, #tpu.memory_space<vmem>>, vector<8x128xf32>
      %cst = arith.constant dense<0.000000e+00> : vector<8xf32>
      %13 = vector.multi_reduction <add>, %12, %cst [1] : vector<8x128xf32> to vector<8xf32>
      %14 = vector.shape_cast %13 : vector<8xf32> to vector<8x1xf32>
      %cst_11 = arith.constant 3.906250e-03 : f32
      %15 = vector.broadcast %cst_11 : f32 to vector<8x1xf32>
      %16 = arith.mulf %14, %15 : vector<8x1xf32>
      %c0_12 = arith.constant 0 : index
      %c0_13 = arith.constant 0 : index
      %17 = vector.load %arg3[%c0_12, %c0_13] : memref<8x1xf32, #tpu.memory_space<vmem>>, vector<8x1xf32>
      tpu.vector_store %arg3[%c0_12, %c0_13], %16 {strides = array<i32>} : memref<8x1xf32, #tpu.memory_space<vmem>>, vector<8x1xf32>,
    } else {
    }
    return
  }
  func.func @transform_0(%arg0: i32, %arg1: i32) -> (i32, i32) {
    %c0_i32 = arith.constant 0 : i32
    return %arg0, %arg1 : i32, i32
  }
  func.func @transform_1(%arg0: i32, %arg1: i32) -> (i32, i32) {
    %c0_i32 = arith.constant 0 : i32
    %c0_i32_0 = arith.constant 0 : i32
    return %arg0, %c0_i32 : i32, i32
  }
}

</mosaic_0001>

<bundles_post_ra>
// kernel: tpu_custom_call.1
= control target key start
LH: loop header
LB: loop body
LE: loop exit
PB: predicated region body
PF: predicated region fallthrough
CT: control target
= control target key end

     0   :  { %6 = vsyncpa [#allocation4], 0  ;;  %s68_s6 = smov [#allocation3]   ;;  %s85_s0 = inlined_call_operand.hbm [shape: f32[8,256], index: 0, kind: input, shape index: {}]   ;;  %s86_s1 = inlined_call_operand.vmem [shape: f32[8,1], index: 1, kind: output, shape index: {}]  }
   0x1   :  { %s13_s7 = sshll.u32 %s68_s6, 4  ;;  %s14_s7 = int_to_ptr.vmem [resolvable:$true] %s13_s7 }
   0x2   :  { %s54_s8 = scalar_lea.vmem %s14_s7, 256  ;;  %p59_p1 = scmp.lt.s32.totalorder %s14_s7, %s14_s7 }
   0x3   :  { %p55_p0 = scmp.ne.s32.totalorder %s14_s7, %s54_s8  ;;  %p60_p2 = scmp.lt.s32.totalorder %s54_s8, %s54_s8 }
   0x5   :  { %p61_p3 = por %p60_p2, %p59_p1 }
   0x7   :  { %p62_p4 = pnand %p61_p3, %p55_p0 }
   0x9   :  { %65 = shalt.err (!%p62_p4)
}
   0xa   :  { %16 = dma.hbm_to_vmem [thread:$0]  %s85_s0, 256, %s14_s7, [#allocation4]  }
   0xb   :  { %66 = dma.done.wait [#allocation4], 256  }
   0xc   :  { %67 = vsyncadd [#allocation4], 4294967040  ;;  %v25_v0 = vld [vmem:[#allocation3] sm:$0xff]  ;;  %v26_v1 = vld [vmem:[#allocation3 + $0x8] sm:$0xff]  ;;  %vm38_vm0 = vcmask 7168  }
   0xd   :  { %v27_v2 = vadd.f32 %v26_v1, %v25_v0 }
   0xf   :  { %35 = vadd.xlane.f32.xlu0 %v27_v2 }
  0x98   :  { %v36_v3 = vpop.xlane.xlu0 %35 }
  0x99   :  { %v37_v4 = vmul.f32 0.00390625, %v36_v3 }
  0x9b   :  { %39 = vst.msk [vmem:[%s86_s1] sm:$0xff] %vm38_vm0, %v37_v4 }
  0x9c   :  { %44 = vsyncpa [#allocation4], 1 }

</bundles_post_ra>
